<compile_context>
chip_gen: v6e
topology: v6e:2x2x1
jax: 0.10.0
libtpu: 0.0.40
codegen_flags: <defaults>
</compile_context>

<pallas_src>
import functools

import jax
import jax.numpy as jnp
from jax.experimental import pallas as pl
from jax.experimental.pallas import tpu as pltpu

LANES = 128
MAX_ROW_TILE = 4096      # 4096 x 128 x f32 = 2 MiB per input per grid step
NUM_TC_SPLITS = 2        # leading "parallel" axis; uses both TCs on v7x
SMALL_INPUT_ELEMS = 1 << 20  # below this, plain fused XLA beats a kernel launch


def _sublane_multiple(dtype) -> int:
    """Packed sublane multiple: 8 for 4-byte, 16 for 2-byte, 32 for 1-byte."""
    itemsize = jnp.dtype(dtype).itemsize
    return max(8, 8 * (4 // max(int(itemsize), 1)))


def _rmse_partial_kernel(pred_ref, y_ref, out_ref, *, row_tile, steps_per_split,
                         total_rows, needs_mask):
    """Accumulates sum((pred - y)^2) for this split into an (8,128) partial."""
    c = pl.program_id(0)   # TensorCore split ("parallel")
    i = pl.program_id(1)   # reduction step within the split ("arbitrary")

    @pl.when(i == 0)
    def _():
        out_ref[...] = jnp.zeros_like(out_ref)

    d = pred_ref[...].astype(jnp.float32) - y_ref[...].astype(jnp.float32)
    sq = d * d

    def _accumulate(vals):
        # (row_tile,128) -> (row_tile//8, 8, 128): splits the sublane dim only,
        # so each group is one f32 vreg block; sum(axis=0) is pure VALU adds.
        out_ref[...] += jnp.sum(vals.reshape(-1, 8, LANES), axis=0)[None, :, :]

    if needs_mask:
        gb = c * steps_per_split + i          # global block index (unclamped)
        full_blocks = total_rows // row_tile  # blocks that are fully in range

        @pl.when(gb < full_blocks)
        def _():
            _accumulate(sq)

        @pl.when(gb >= full_blocks)
        def _():
            # Boundary block (partial rows) or a clamped duplicate step:
            # zero out rows past the end of the slab before accumulating.
            row = (jax.lax.broadcasted_iota(jnp.int32, (row_tile, LANES), 0)
                   + gb * row_tile)
            _accumulate(jnp.where(row < total_rows, sq, jnp.float32(0.0)))
    else:
        _accumulate(sq)


def rmse_loss(pred, y, eps=1e-6, *, min_pallas_elems=SMALL_INPUT_ELEMS):
    """Pallas TPU implementation of torch RMSELoss: sqrt(MSE(pred, y) + eps)."""
    assert pred.shape == y.shape, "pred and y must have the same shape"
    n_elems = pred.size

    # Fallback: tiny inputs (launch overhead dominates) or ragged element
    # counts (can't form a copy-free (rows,128) view). One fused XLA pass.
    if n_elems < min_pallas_elems or n_elems % LANES != 0:
        d = pred.astype(jnp.float32) - y.astype(jnp.float32)
        return jnp.sqrt(jnp.mean(d * d) + jnp.float32(eps))

    # Metadata-only reshape for contiguous inputs; native dtype (cast in-kernel).
    rows = n_elems // LANES
    pred2d = pred.reshape(rows, LANES)
    y2d = y.reshape(rows, LANES)

    # Sublane-aligned tile for the *native* dtype so packed vregs stay dense.
    sub_mult = max(_sublane_multiple(pred.dtype), _sublane_multiple(y.dtype))
    row_tile = min(MAX_ROW_TILE, pl.cdiv(rows, sub_mult) * sub_mult)

    steps_total = pl.cdiv(rows, row_tile)
    num_splits = min(NUM_TC_SPLITS, steps_total)
    steps_per_split = pl.cdiv(steps_total, num_splits)
    padded_steps = num_splits * steps_per_split

    # Only the boundary block(s) ever need masking; the aligned common case
    # compiles to a single unconditional accumulate per step.
    needs_mask = (rows % row_tile != 0) or (padded_steps != steps_total)

    if padded_steps != steps_total:
        last_block = steps_total - 1

        def in_map(c, i):
            # Clamp duplicate tail steps onto the last valid block; their
            # contribution is zeroed by the in-kernel row mask.
            return (jnp.minimum(c * steps_per_split + i, last_block), 0)
    else:
        def in_map(c, i):
            return (c * steps_per_split + i, 0)

    kernel = functools.partial(
        _rmse_partial_kernel,
        row_tile=row_tile,
        steps_per_split=steps_per_split,
        total_rows=rows,
        needs_mask=needs_mask,
    )

    partials = pl.pallas_call(
        kernel,
        out_shape=jax.ShapeDtypeStruct((num_splits, 8, LANES), jnp.float32),
        grid_spec=pltpu.PrefetchScalarGridSpec(
            num_scalar_prefetch=0,
            grid=(num_splits, steps_per_split),
            in_specs=[
                pl.BlockSpec((row_tile, LANES), in_map),
                pl.BlockSpec((row_tile, LANES), in_map),
            ],
            # Same block index across the reduction axis -> resident accumulator.
            out_specs=pl.BlockSpec((1, 8, LANES), lambda c, i: (c, 0, 0)),
        ),
        compiler_params=pltpu.CompilerParams(
            dimension_semantics=("parallel", "arbitrary"),
        ),
        cost_estimate=pl.CostEstimate(
            flops=3 * n_elems,
            transcendentals=0,
            bytes_accessed=int(pred2d.nbytes) + int(y2d.nbytes)
            + num_splits * 8 * LANES * 4,
        ),
    )(pred2d, y2d)

    # Tiny final combine in the wrapper: sum partials, mean, sqrt(+eps).
    mse = jnp.sum(partials) / jnp.float32(n_elems)
    return jnp.sqrt(mse + jnp.float32(eps))


if __name__ == "__main__":
    key = jax.random.PRNGKey(0)
    k1, k2 = jax.random.split(key)

    # Small NCHW-like shapes consistent with a regression output.
    pred = jax.random.normal(k1, (2, 4, 16, 16), dtype=jnp.float32)
    y = jax.random.normal(k2, (2, 4, 16, 16), dtype=jnp.float32)

    # Force the Pallas path (the default small-input fast path would otherwise
    # take the fused-XLA fallback for this tiny test shape).
    loss = rmse_loss(pred, y, eps=1e-6, min_pallas_elems=0)
    loss = jax.block_until_ready(loss)

    ref = jnp.sqrt(jnp.mean((pred - y) ** 2) + 1e-6)
    assert jnp.allclose(loss, ref, rtol=1e-5, atol=1e-6), (loss, ref)

    # Also exercise the native low-precision (bf16) input path (sub_mult=16).
    pred_bf = pred.astype(jnp.bfloat16)
    y_bf = y.astype(jnp.bfloat16)
    loss_bf = rmse_loss(pred_bf, y_bf, eps=1e-6, min_pallas_elems=0)
    loss_bf = jax.block_until_ready(loss_bf)
    d_bf = pred_bf.astype(jnp.float32) - y_bf.astype(jnp.float32)
    ref_bf = jnp.sqrt(jnp.mean(d_bf * d_bf) + 1e-6)
    assert jnp.allclose(loss_bf, ref_bf, rtol=1e-4, atol=1e-5), (loss_bf, ref_bf)

    print("KERNEL_OK")
</pallas_src>

<mosaic_0001>
module attributes {stable_mosaic.version = 11 : i64} {
  func.func @_rmse_partial_kernel(%arg0: i32, %arg1: i32, %arg2: memref<16x128xf32, #tpu.memory_space<vmem>>, %arg3: memref<16x128xf32, #tpu.memory_space<vmem>>, %arg4: memref<1x8x128xf32, #tpu.memory_space<vmem>>) attributes {dimension_semantics = [#tpu.dimension_semantics<parallel>, #tpu.dimension_semantics<arbitrary>], iteration_bounds = array<i64: 1, 1>, scalar_prefetch = 0 : i64, scratch_operands = 0 : i64, tpu.core_type = #tpu.core_type<tc>, window_params = [{transform_indices = @transform_0, window_bounds = array<i64: 16, 128>}, {transform_indices = @transform_1, window_bounds = array<i64: 16, 128>}, {transform_indices = @transform_2, window_bounds = array<i64: 1, 8, 128>}]} {
    %c0_i32 = arith.constant 0 : i32
    %0 = arith.cmpi eq, %arg1, %c0_i32 : i32
    %1 = arith.extui %0 : i1 to i32
    %c0_i32_0 = arith.constant 0 : i32
    %2 = arith.cmpi ne, %1, %c0_i32_0 : i32
    scf.if %2 {
      %cst_10 = arith.constant 0.000000e+00 : f32
      %13 = vector.broadcast %cst_10 : f32 to vector<1x8x128xf32>
      %c0_11 = arith.constant 0 : index
      %c0_12 = arith.constant 0 : index
      %c0_13 = arith.constant 0 : index
      %14 = vector.load %arg4[%c0_11, %c0_12, %c0_13] : memref<1x8x128xf32, #tpu.memory_space<vmem>>, vector<1x8x128xf32>
      tpu.vector_store %arg4[%c0_11, %c0_12, %c0_13], %13 {strides = array<i32>} : memref<1x8x128xf32, #tpu.memory_space<vmem>>, vector<1x8x128xf32>,
    } else {
    }
    %c0 = arith.constant 0 : index
    %c0_1 = arith.constant 0 : index
    %3 = vector.load %arg2[%c0, %c0_1] : memref<16x128xf32, #tpu.memory_space<vmem>>, vector<16x128xf32>
    %c0_2 = arith.constant 0 : index
    %c0_3 = arith.constant 0 : index
    %4 = vector.load %arg3[%c0_2, %c0_3] : memref<16x128xf32, #tpu.memory_space<vmem>>, vector<16x128xf32>
    %5 = arith.subf %3, %4 : vector<16x128xf32>
    %6 = arith.mulf %5, %5 : vector<16x128xf32>
    %c0_4 = arith.constant 0 : index
    %c0_5 = arith.constant 0 : index
    %c0_6 = arith.constant 0 : index
    %7 = vector.load %arg4[%c0_4, %c0_5, %c0_6] : memref<1x8x128xf32, #tpu.memory_space<vmem>>, vector<1x8x128xf32>
    %8 = vector.shape_cast %6 : vector<16x128xf32> to vector<2x8x128xf32>
    %cst = arith.constant dense<0.000000e+00> : vector<8x128xf32>
    %9 = vector.multi_reduction <add>, %8, %cst [0] : vector<2x8x128xf32> to vector<8x128xf32>
    %10 = vector.shape_cast %9 : vector<8x128xf32> to vector<1x8x128xf32>
    %11 = arith.addf %7, %10 : vector<1x8x128xf32>
    %c0_7 = arith.constant 0 : index
    %c0_8 = arith.constant 0 : index
    %c0_9 = arith.constant 0 : index
    %12 = vector.load %arg4[%c0_7, %c0_8, %c0_9] : memref<1x8x128xf32, #tpu.memory_space<vmem>>, vector<1x8x128xf32>
    tpu.vector_store %arg4[%c0_7, %c0_8, %c0_9], %11 {strides = array<i32>} : memref<1x8x128xf32, #tpu.memory_space<vmem>>, vector<1x8x128xf32>,
    return
  }
  func.func @transform_0(%arg0: i32, %arg1: i32) -> (i32, i32) {
    %c1_i32 = arith.constant 1 : i32
    %0 = arith.muli %arg0, %c1_i32 : i32
    %1 = arith.addi %0, %arg1 : i32
    %c0_i32 = arith.constant 0 : i32
    %c0_i32_0 = arith.constant 0 : i32
    return %1, %c0_i32 : i32, i32
  }
  func.func @transform_1(%arg0: i32, %arg1: i32) -> (i32, i32) {
    %c1_i32 = arith.constant 1 : i32
    %0 = arith.muli %arg0, %c1_i32 : i32
    %1 = arith.addi %0, %arg1 : i32
    %c0_i32 = arith.constant 0 : i32
    %c0_i32_0 = arith.constant 0 : i32
    return %1, %c0_i32 : i32, i32
  }
  func.func @transform_2(%arg0: i32, %arg1: i32) -> (i32, i32, i32) {
    %c0_i32 = arith.constant 0 : i32
    %c0_i32_0 = arith.constant 0 : i32
    %c0_i32_1 = arith.constant 0 : i32
    return %arg0, %c0_i32, %c0_i32_0 : i32, i32, i32
  }
}

</mosaic_0001>

<bundles_post_ra>
// kernel: tpu_custom_call.1
= control target key start
LH: loop header
LB: loop body
LE: loop exit
PB: predicated region body
PF: predicated region fallthrough
CT: control target
= control target key end

     0   :  { %7 = vsyncpa [#allocation3], 0  ;;  %s186_s0 = inlined_call_operand.hbm [shape: f32[16,128], index: 0, kind: input, shape index: {}]   ;;  %s187_s1 = inlined_call_operand.hbm [shape: f32[16,128], index: 1, kind: input, shape index: {}]   ;;  %s188_s2 = inlined_call_operand.hbm [shape: f32[1,8,128], index: 2, kind: output, shape index: {}]  }
   0x1   :  { %8 = vsyncpa [#allocation6], 0 }
   0x2   :  { %9 = vsyncpa [#allocation4], 0  ;;  %s157_s9 = smov [#allocation2]  }
   0x3   :  { %s19_s10 = sshll.u32 %s157_s9, 4  ;;  %s20_s10 = int_to_ptr.vmem [resolvable:$true] %s19_s10 }
   0x4   :  { %s99_s11 = scalar_lea.vmem %s20_s10, 256  ;;  %p104_p1 = scmp.lt.s32.totalorder %s20_s10, %s20_s10 }
   0x5   :  { %p100_p0 = scmp.ne.s32.totalorder %s20_s10, %s99_s11  ;;  %p105_p2 = scmp.lt.s32.totalorder %s99_s11, %s99_s11 }
   0x7   :  { %p106_p3 = por %p105_p2, %p104_p1 }
   0x9   :  { %p107_p4 = pnand %p106_p3, %p100_p0 }
   0xb   :  { %110 = shalt.err (!%p107_p4)
}
   0xc   :  { %s158_s12 = smov 128   ;;  %s159_s13 = smov 8  }
   0xd   :  { %25 = dma.hbm_to_vmem [thread:$0]  %s186_s0, 256, %s20_s10, [#allocation3], %s158_s12, %s158_s12, %s159_s13  }
   0xe   :  { %s160_s16 = smov [#allocation5]  }
   0xf   :  { %s35_s17 = sshll.u32 %s160_s16, 4  ;;  %s36_s17 = int_to_ptr.vmem [resolvable:$true] %s35_s17 }
  0x10   :  { %s119_s18 = scalar_lea.vmem %s36_s17, 256  ;;  %p124_p6 = scmp.lt.s32.totalorder %s36_s17, %s36_s17 }
  0x11   :  { %p120_p5 = scmp.ne.s32.totalorder %s36_s17, %s119_s18  ;;  %p125_p7 = scmp.lt.s32.totalorder %s119_s18, %s119_s18 }
  0x13   :  { %p126_p8 = por %p125_p7, %p124_p6 }
  0x15   :  { %p127_p9 = pnand %p126_p8, %p120_p5 }
  0x17   :  { %130 = shalt.err (!%p127_p9)
}
  0x18   :  { %41 = dma.hbm_to_vmem [thread:$0]  %s187_s1, 256, %s36_s17, [#allocation6], %s158_s12, %s158_s12, %s159_s13  }
  0x19   :  { %151 = dma.done.wait [#allocation3], 256  }
  0x1a   :  { %152 = vsyncadd [#allocation3], 4294967040 }
  0x1b   :  { %153 = dma.done.wait [#allocation6], 256  }
  0x1c   :  { %154 = vsyncadd [#allocation6], 4294967040  ;;  %v57_v0 = vld [vmem:[#allocation2] sm:$0xff]  ;;  %v58_v1 = vld [vmem:[#allocation2 + $0x8] sm:$0xff]  ;;  %s161_s0 = smov [#allocation7]  }
  0x1d   :  { %v59_v2 = vld [vmem:[#allocation5] sm:$0xff]  ;;  %v60_v3 = vld [vmem:[#allocation5 + $0x8] sm:$0xff]  ;;  %s75_s21 = sshll.u32 %s161_s0, 4  ;;  %s76_s21 = int_to_ptr.vmem [resolvable:$true] %s75_s21 }
  0x1e   :  { %v61_v4 = vsub.f32 %v57_v0, %v59_v2  ;;  %v62_v5 = vsub.f32 %v58_v1, %v60_v3  ;;  %s131_s22 = scalar_lea.vmem %s76_s21, 128  ;;  %p136_p11 = scmp.lt.s32.totalorder %s76_s21, %s76_s21 }
  0x1f   :  { %p132_p10 = scmp.ne.s32.totalorder %s76_s21, %s131_s22  ;;  %p137_p12 = scmp.lt.s32.totalorder %s131_s22, %s131_s22 }
  0x20   :  { %v63_v6 = vmul.f32 %v61_v4, %v61_v4  ;;  %v64_v7 = vmul.f32 %v62_v5, %v62_v5 }
  0x21   :  { %p138_p13 = por %p137_p12, %p136_p11 }
  0x22   :  { %v66_v8 = vadd.f32 %v64_v7, %v63_v6 }
  0x23   :  { %p139_p0 = pnand %p138_p13, %p132_p10 }
  0x24   :  { %68 = vst [vmem:[#allocation7] sm:$0xff] %v66_v8 }
  0x25   :  { %142 = shalt.err (!%p139_p0)
}
  0x26   :  { %78 = dma.vmem_to_hbm [thread:$0]  %s76_s21, 128, %s188_s2, [#allocation4]  }
  0x27   :  { %155 = dma.done.wait [#allocation4], 128  }
  0x28   :  { %156 = vsyncadd [#allocation4], 4294967168 }
  0x29   :  { %82 = vsyncpa [#allocation3], 1 }
  0x2a   :  { %83 = vsyncpa [#allocation6], 1 }
  0x2b   :  { %84 = vsyncpa [#allocation4], 1 }

</bundles_post_ra>
